<compile_context>
chip_gen: v5e
topology: v5e:2x2
jax: 0.10.0
libtpu: 0.0.40
codegen_flags: <defaults>
</compile_context>

<pallas_src>
import functools

import jax
import jax.numpy as jnp
from jax.experimental import pallas as pl
from jax.experimental.pallas import tpu as pltpu


def _loss_kernel(pred_ref, target_ref, out_ref, acc_d2, acc_p, acc_p2, *,
                 n_rows, tile_n, h, two_h, m,
                 inflow_w, outflow_w, div_w, mask_tail):
    """pred_ref/target_ref: (tile_n, 2*H) blocks; out_ref: (1,1) f32; acc_*: (1, 2*H) f32."""
    step = pl.program_id(0)

    @pl.when(step == 0)
    def _init():
        acc_d2[...] = jnp.zeros_like(acc_d2)
        acc_p[...] = jnp.zeros_like(acc_p)
        acc_p2[...] = jnp.zeros_like(acc_p2)

    # Upcast in-kernel (inputs stay bf16/f32/etc. over HBM).
    x = pred_ref[...].astype(jnp.float32)     # (tile_n, 2H)
    t = target_ref[...].astype(jnp.float32)

    if mask_tail:
        # Last block may extend past N: zero-out invalid rows so they contribute nothing.
        rows = step * tile_n + jax.lax.broadcasted_iota(jnp.int32, (tile_n, two_h), 0)
        valid = rows < n_rows
        x = jnp.where(valid, x, 0.0)
        t = jnp.where(valid, t, 0.0)

    # One fused pass over the tile: accumulate per-lane sufficient statistics.
    d = x - t
    acc_d2[...] += jnp.sum(d * d, axis=0, keepdims=True)   # (1, 2H)
    acc_p[...] += jnp.sum(x, axis=0, keepdims=True)
    acc_p2[...] += jnp.sum(x * x, axis=0, keepdims=True)

    @pl.when(step == pl.num_programs(0) - 1)
    def _finalize():
        # Lanes [0, H) are the inflow channel, [H, 2H) the outflow channel.
        lane = jax.lax.broadcasted_iota(jnp.int32, (1, two_h), 1)
        in_mask = lane < h

        def _split(acc):
            v = acc[...]
            total = jnp.sum(v, axis=1, keepdims=True)                       # (1, 1)
            ch_in = jnp.sum(jnp.where(in_mask, v, 0.0), axis=1, keepdims=True)
            return ch_in, total - ch_in

        d2_in, d2_out = _split(acc_d2)
        p_in, p_out = _split(acc_p)
        p2_in, p2_out = _split(acc_p2)

        m_f = float(m)
        base = (inflow_w * d2_in + outflow_w * d2_out) / m_f
        # unbiased variance from one-pass sufficient statistics (f32 accumulation)
        var_in = (p2_in - p_in * p_in / m_f) / (m_f - 1.0)
        var_out = (p2_out - p_out * p_out / m_f) / (m_f - 1.0)
        std = 0.5 * (jnp.sqrt(jnp.maximum(var_in, 0.0)) +
                     jnp.sqrt(jnp.maximum(var_out, 0.0)))
        # exact divide kept for bit-accuracy vs reference (pl.reciprocal(approx=True) also works)
        out_ref[...] = base + div_w / (std + 1e-6)


def weighted_mse_loss_with_diversity(pred, target,
                                     inflow_weight=2.0,
                                     outflow_weight=1.0,
                                     diversity_weight=0.2,
                                     tile_n=None):
    """pred, target: (N, 2, H, 1) NCHW tensors (C must be 2, W must be 1)."""
    n, c, h, w = pred.shape
    assert c == 2 and w == 1, "expects C=2 (inflow/outflow) and W=1"
    assert target.shape == pred.shape
    two_h = 2 * h
    m = n * h

    # Free, contiguous reshape — no transpose, no dtype cast, no HBM copy.
    p2 = pred.reshape(n, two_h)
    t2 = target.reshape(n, two_h)

    itemsize = pred.dtype.itemsize
    # sublane packing granularity for the block's second-minor dim
    sublane = {4: 8, 2: 16, 1: 32}.get(itemsize, 8)

    # ~1 MiB of (lane-padded) VMEM per input tile: double-buffered x 2 inputs stays well
    # under the 16 MiB scoped default on v5e and the 32 MiB defaults on v6e/v7x.
    padded_row_bytes = ((two_h + 127) // 128) * 128 * itemsize
    if tile_n is None:
        tile_n = max(1, (1 << 20) // max(padded_row_bytes, 1))
    if tile_n >= n:
        tile_n = n                                        # single block (always legal)
    else:
        tile_n = max(sublane, (tile_n // sublane) * sublane)
        if tile_n >= n:
            tile_n = n
    steps = pl.cdiv(n, tile_n)
    mask_tail = (n % tile_n) != 0

    kernel = functools.partial(
        _loss_kernel,
        n_rows=int(n), tile_n=int(tile_n), h=int(h), two_h=int(two_h), m=int(m),
        inflow_w=float(inflow_weight), outflow_w=float(outflow_weight),
        div_w=float(diversity_weight), mask_tail=bool(mask_tail))

    grid_spec = pltpu.PrefetchScalarGridSpec(
        num_scalar_prefetch=0,
        grid=(steps,),
        in_specs=[
            pl.BlockSpec((tile_n, two_h), lambda i: (i, 0)),
            pl.BlockSpec((tile_n, two_h), lambda i: (i, 0)),
        ],
        out_specs=pl.BlockSpec((1, 1), lambda i: (0, 0)),
        scratch_shapes=[
            pltpu.VMEM((1, two_h), jnp.float32),   # sum((p - t)^2) per lane
            pltpu.VMEM((1, two_h), jnp.float32),   # sum(p)         per lane
            pltpu.VMEM((1, two_h), jnp.float32),   # sum(p^2)       per lane
        ],
    )

    bytes_accessed = 2 * n * two_h * itemsize + 4
    cost = pl.CostEstimate(flops=int(8 * n * two_h), transcendentals=2,
                           bytes_accessed=int(bytes_accessed))

    out = pl.pallas_call(
        kernel,
        out_shape=jax.ShapeDtypeStruct((1, 1), jnp.float32),
        grid_spec=grid_spec,
        compiler_params=pltpu.CompilerParams(dimension_semantics=("arbitrary",)),
        cost_estimate=cost,
    )(p2, t2)
    return out[0, 0]


def _reference(pred, target, inflow_w=2.0, outflow_w=1.0, div_w=0.2):
    # Pure-JAX mirror of the PyTorch module (unbiased std, ddof=1).
    p = jnp.squeeze(jnp.transpose(pred, (0, 2, 3, 1)), axis=-2).astype(jnp.float32)
    t = jnp.squeeze(jnp.transpose(target, (0, 2, 3, 1)), axis=-2).astype(jnp.float32)
    inflow_loss = jnp.mean((p[..., 0] - t[..., 0]) ** 2)
    outflow_loss = jnp.mean((p[..., 1] - t[..., 1]) ** 2)
    base = inflow_w * inflow_loss + outflow_w * outflow_loss
    station_std = jnp.mean(jnp.std(p.reshape(-1, p.shape[-1]), axis=0, ddof=1))
    return base + div_w * (1.0 / (station_std + 1e-6))


if __name__ == "__main__":
    key = jax.random.PRNGKey(0)
    k1, k2, k3, k4 = jax.random.split(key, 4)

    # 1) Small single-tile case: N=2, C=2, H=16, W=1 (NCHW), f32.
    pred = jax.random.normal(k1, (2, 2, 16, 1), dtype=jnp.float32)
    target = jax.random.normal(k2, (2, 2, 16, 1), dtype=jnp.float32)
    loss = weighted_mse_loss_with_diversity(pred, target)
    jax.block_until_ready(loss)
    ref = _reference(pred, target)
    assert jnp.allclose(loss, ref, rtol=1e-4, atol=1e-4), (loss, ref)

    # 2) Multi-step grid with a masked ragged tail: N=20 streamed with tile_n=8.
    pred2 = jax.random.normal(k3, (20, 2, 16, 1), dtype=jnp.float32)
    target2 = jax.random.normal(k4, (20, 2, 16, 1), dtype=jnp.float32)
    loss2 = weighted_mse_loss_with_diversity(pred2, target2, tile_n=8)
    jax.block_until_ready(loss2)
    ref2 = _reference(pred2, target2)
    assert jnp.allclose(loss2, ref2, rtol=1e-4, atol=1e-4), (loss2, ref2)

    # 3) Native bf16 over HBM (upcast happens per tile inside the kernel).
    pred3 = pred2.astype(jnp.bfloat16)
    target3 = target2.astype(jnp.bfloat16)
    loss3 = weighted_mse_loss_with_diversity(pred3, target3, tile_n=8)
    jax.block_until_ready(loss3)
    ref3 = _reference(pred3, target3)
    assert jnp.allclose(loss3, ref3, rtol=2e-3, atol=2e-3), (loss3, ref3)

    print("KERNEL_OK")
</pallas_src>

<mosaic_0001>
module attributes {stable_mosaic.version = 11 : i64} {
  func.func @_loss_kernel(%arg0: i32, %arg1: memref<2x32xf32, #tpu.memory_space<vmem>>, %arg2: memref<2x32xf32, #tpu.memory_space<vmem>>, %arg3: memref<1x1xf32, #tpu.memory_space<vmem>>, %arg4: memref<1x32xf32, #tpu.memory_space<vmem>>, %arg5: memref<1x32xf32, #tpu.memory_space<vmem>>, %arg6: memref<1x32xf32, #tpu.memory_space<vmem>>) attributes {dimension_semantics = [#tpu.dimension_semantics<arbitrary>], iteration_bounds = array<i64: 1>, scalar_prefetch = 0 : i64, scratch_operands = 3 : i64, tpu.core_type = #tpu.core_type<tc>, window_params = [{transform_indices = @transform_0, window_bounds = array<i64: 2, 32>}, {transform_indices = @transform_1, window_bounds = array<i64: 2, 32>}, {pipeline_mode = #tpu.pipeline_mode<synchronous>, transform_indices = @transform_2, window_bounds = array<i64: 1, 1>}]} {
    %c0_i32 = arith.constant 0 : i32
    %0 = arith.cmpi eq, %arg0, %c0_i32 : i32
    %1 = arith.extui %0 : i1 to i32
    %c0_i32_0 = arith.constant 0 : i32
    %2 = arith.cmpi ne, %1, %c0_i32_0 : i32
    scf.if %2 {
      %cst_20 = arith.constant 0.000000e+00 : f32
      %26 = vector.broadcast %cst_20 : f32 to vector<1x32xf32>
      %c0_21 = arith.constant 0 : index
      %c0_22 = arith.constant 0 : index
      %27 = vector.load %arg4[%c0_21, %c0_22] : memref<1x32xf32, #tpu.memory_space<vmem>>, vector<1x32xf32>
      tpu.vector_store %arg4[%c0_21, %c0_22], %26 {strides = array<i32>} : memref<1x32xf32, #tpu.memory_space<vmem>>, vector<1x32xf32>,
      %cst_23 = arith.constant 0.000000e+00 : f32
      %28 = vector.broadcast %cst_23 : f32 to vector<1x32xf32>
      %c0_24 = arith.constant 0 : index
      %c0_25 = arith.constant 0 : index
      %29 = vector.load %arg5[%c0_24, %c0_25] : memref<1x32xf32, #tpu.memory_space<vmem>>, vector<1x32xf32>
      tpu.vector_store %arg5[%c0_24, %c0_25], %28 {strides = array<i32>} : memref<1x32xf32, #tpu.memory_space<vmem>>, vector<1x32xf32>,
      %cst_26 = arith.constant 0.000000e+00 : f32
      %30 = vector.broadcast %cst_26 : f32 to vector<1x32xf32>
      %c0_27 = arith.constant 0 : index
      %c0_28 = arith.constant 0 : index
      %31 = vector.load %arg6[%c0_27, %c0_28] : memref<1x32xf32, #tpu.memory_space<vmem>>, vector<1x32xf32>
      tpu.vector_store %arg6[%c0_27, %c0_28], %30 {strides = array<i32>} : memref<1x32xf32, #tpu.memory_space<vmem>>, vector<1x32xf32>,
    } else {
    }
    %c0 = arith.constant 0 : index
    %c0_1 = arith.constant 0 : index
    %3 = vector.load %arg1[%c0, %c0_1] : memref<2x32xf32, #tpu.memory_space<vmem>>, vector<2x32xf32>
    %c0_2 = arith.constant 0 : index
    %c0_3 = arith.constant 0 : index
    %4 = vector.load %arg2[%c0_2, %c0_3] : memref<2x32xf32, #tpu.memory_space<vmem>>, vector<2x32xf32>
    %5 = arith.subf %3, %4 : vector<2x32xf32>
    %c0_4 = arith.constant 0 : index
    %c0_5 = arith.constant 0 : index
    %6 = vector.load %arg4[%c0_4, %c0_5] : memref<1x32xf32, #tpu.memory_space<vmem>>, vector<1x32xf32>
    %7 = arith.mulf %5, %5 : vector<2x32xf32>
    %cst = arith.constant dense<0.000000e+00> : vector<32xf32>
    %8 = vector.multi_reduction <add>, %7, %cst [0] : vector<2x32xf32> to vector<32xf32>
    %9 = vector.shape_cast %8 : vector<32xf32> to vector<1x32xf32>
    %10 = arith.addf %6, %9 : vector<1x32xf32>
    %c0_6 = arith.constant 0 : index
    %c0_7 = arith.constant 0 : index
    %11 = vector.load %arg4[%c0_6, %c0_7] : memref<1x32xf32, #tpu.memory_space<vmem>>, vector<1x32xf32>
    tpu.vector_store %arg4[%c0_6, %c0_7], %10 {strides = array<i32>} : memref<1x32xf32, #tpu.memory_space<vmem>>, vector<1x32xf32>,
    %c0_8 = arith.constant 0 : index
    %c0_9 = arith.constant 0 : index
    %12 = vector.load %arg5[%c0_8, %c0_9] : memref<1x32xf32, #tpu.memory_space<vmem>>, vector<1x32xf32>
    %cst_10 = arith.constant dense<0.000000e+00> : vector<32xf32>
    %13 = vector.multi_reduction <add>, %3, %cst_10 [0] : vector<2x32xf32> to vector<32xf32>
    %14 = vector.shape_cast %13 : vector<32xf32> to vector<1x32xf32>
    %15 = arith.addf %12, %14 : vector<1x32xf32>
    %c0_11 = arith.constant 0 : index
    %c0_12 = arith.constant 0 : index
    %16 = vector.load %arg5[%c0_11, %c0_12] : memref<1x32xf32, #tpu.memory_space<vmem>>, vector<1x32xf32>
    tpu.vector_store %arg5[%c0_11, %c0_12], %15 {strides = array<i32>} : memref<1x32xf32, #tpu.memory_space<vmem>>, vector<1x32xf32>,
    %c0_13 = arith.constant 0 : index
    %c0_14 = arith.constant 0 : index
    %17 = vector.load %arg6[%c0_13, %c0_14] : memref<1x32xf32, #tpu.memory_space<vmem>>, vector<1x32xf32>
    %18 = arith.mulf %3, %3 : vector<2x32xf32>
    %cst_15 = arith.constant dense<0.000000e+00> : vector<32xf32>
    %19 = vector.multi_reduction <add>, %18, %cst_15 [0] : vector<2x32xf32> to vector<32xf32>
    %20 = vector.shape_cast %19 : vector<32xf32> to vector<1x32xf32>
    %21 = arith.addf %17, %20 : vector<1x32xf32>
    %c0_16 = arith.constant 0 : index
    %c0_17 = arith.constant 0 : index
    %22 = vector.load %arg6[%c0_16, %c0_17] : memref<1x32xf32, #tpu.memory_space<vmem>>, vector<1x32xf32>
    tpu.vector_store %arg6[%c0_16, %c0_17], %21 {strides = array<i32>} : memref<1x32xf32, #tpu.memory_space<vmem>>, vector<1x32xf32>,
    %c0_i32_18 = arith.constant 0 : i32
    %23 = arith.cmpi eq, %arg0, %c0_i32_18 : i32
    %24 = arith.extui %23 : i1 to i32
    %c0_i32_19 = arith.constant 0 : i32
    %25 = arith.cmpi ne, %24, %c0_i32_19 : i32
    scf.if %25 {
      %26 = tpu.iota {dimensions = array<i32: 1>} : vector<1x32xi32>
      %c16_i32 = arith.constant 16 : i32
      %27 = vector.broadcast %c16_i32 : i32 to vector<1x32xi32>
      %28 = arith.cmpi slt, %26, %27 : vector<1x32xi32>
      %c0_20 = arith.constant 0 : index
      %c0_21 = arith.constant 0 : index
      %29 = vector.load %arg4[%c0_20, %c0_21] : memref<1x32xf32, #tpu.memory_space<vmem>>, vector<1x32xf32>
      %cst_22 = arith.constant dense<0.000000e+00> : vector<1xf32>
      %30 = vector.multi_reduction <add>, %29, %cst_22 [1] : vector<1x32xf32> to vector<1xf32>
      %31 = vector.shape_cast %30 : vector<1xf32> to vector<1x1xf32>
      %cst_23 = arith.constant 0.000000e+00 : f32
      %32 = vector.broadcast %cst_23 : f32 to vector<1x32xf32>
      %33 = arith.select %28, %29, %32 : vector<1x32xi1>, vector<1x32xf32>
      %cst_24 = arith.constant dense<0.000000e+00> : vector<1xf32>
      %34 = vector.multi_reduction <add>, %33, %cst_24 [1] : vector<1x32xf32> to vector<1xf32>
      %35 = vector.shape_cast %34 : vector<1xf32> to vector<1x1xf32>
      %36 = arith.subf %31, %35 : vector<1x1xf32>
      %c0_25 = arith.constant 0 : index
      %c0_26 = arith.constant 0 : index
      %37 = vector.load %arg5[%c0_25, %c0_26] : memref<1x32xf32, #tpu.memory_space<vmem>>, vector<1x32xf32>
      %cst_27 = arith.constant dense<0.000000e+00> : vector<1xf32>
      %38 = vector.multi_reduction <add>, %37, %cst_27 [1] : vector<1x32xf32> to vector<1xf32>
      %39 = vector.shape_cast %38 : vector<1xf32> to vector<1x1xf32>
      %cst_28 = arith.constant 0.000000e+00 : f32
      %40 = vector.broadcast %cst_28 : f32 to vector<1x32xf32>
      %41 = arith.select %28, %37, %40 : vector<1x32xi1>, vector<1x32xf32>
      %cst_29 = arith.constant dense<0.000000e+00> : vector<1xf32>
      %42 = vector.multi_reduction <add>, %41, %cst_29 [1] : vector<1x32xf32> to vector<1xf32>
      %43 = vector.shape_cast %42 : vector<1xf32> to vector<1x1xf32>
      %44 = arith.subf %39, %43 : vector<1x1xf32>
      %c0_30 = arith.constant 0 : index
      %c0_31 = arith.constant 0 : index
      %45 = vector.load %arg6[%c0_30, %c0_31] : memref<1x32xf32, #tpu.memory_space<vmem>>, vector<1x32xf32>
      %cst_32 = arith.constant dense<0.000000e+00> : vector<1xf32>
      %46 = vector.multi_reduction <add>, %45, %cst_32 [1] : vector<1x32xf32> to vector<1xf32>
      %47 = vector.shape_cast %46 : vector<1xf32> to vector<1x1xf32>
      %cst_33 = arith.constant 0.000000e+00 : f32
      %48 = vector.broadcast %cst_33 : f32 to vector<1x32xf32>
      %49 = arith.select %28, %45, %48 : vector<1x32xi1>, vector<1x32xf32>
      %cst_34 = arith.constant dense<0.000000e+00> : vector<1xf32>
      %50 = vector.multi_reduction <add>, %49, %cst_34 [1] : vector<1x32xf32> to vector<1xf32>
      %51 = vector.shape_cast %50 : vector<1xf32> to vector<1x1xf32>
      %52 = arith.subf %47, %51 : vector<1x1xf32>
      %cst_35 = arith.constant 2.000000e+00 : f32
      %53 = vector.broadcast %cst_35 : f32 to vector<1x1xf32>
      %54 = arith.mulf %53, %35 : vector<1x1xf32>
      %cst_36 = arith.constant 1.000000e+00 : f32
      %55 = vector.broadcast %cst_36 : f32 to vector<1x1xf32>
      %56 = arith.mulf %55, %36 : vector<1x1xf32>
      %57 = arith.addf %54, %56 : vector<1x1xf32>
      %cst_37 = arith.constant 3.200000e+01 : f32
      %58 = vector.broadcast %cst_37 : f32 to vector<1x1xf32>
      %59 = arith.divf %57, %58 : vector<1x1xf32>
      %60 = arith.mulf %43, %43 : vector<1x1xf32>
      %cst_38 = arith.constant 3.200000e+01 : f32
      %61 = vector.broadcast %cst_38 : f32 to vector<1x1xf32>
      %62 = arith.divf %60, %61 : vector<1x1xf32>
      %63 = arith.subf %51, %62 : vector<1x1xf32>
      %cst_39 = arith.constant 3.100000e+01 : f32
      %64 = vector.broadcast %cst_39 : f32 to vector<1x1xf32>
      %65 = arith.divf %63, %64 : vector<1x1xf32>
      %66 = arith.mulf %44, %44 : vector<1x1xf32>
      %cst_40 = arith.constant 3.200000e+01 : f32
      %67 = vector.broadcast %cst_40 : f32 to vector<1x1xf32>
      %68 = arith.divf %66, %67 : vector<1x1xf32>
      %69 = arith.subf %52, %68 : vector<1x1xf32>
      %cst_41 = arith.constant 3.100000e+01 : f32
      %70 = vector.broadcast %cst_41 : f32 to vector<1x1xf32>
      %71 = arith.divf %69, %70 : vector<1x1xf32>
      %cst_42 = arith.constant 0.000000e+00 : f32
      %72 = vector.broadcast %cst_42 : f32 to vector<1x1xf32>
      %73 = arith.maximumf %65, %72 : vector<1x1xf32>
      %74 = math.sqrt %73 : vector<1x1xf32>
      %cst_43 = arith.constant 0.000000e+00 : f32
      %75 = vector.broadcast %cst_43 : f32 to vector<1x1xf32>
      %76 = arith.maximumf %71, %75 : vector<1x1xf32>
      %77 = math.sqrt %76 : vector<1x1xf32>
      %78 = arith.addf %74, %77 : vector<1x1xf32>
      %cst_44 = arith.constant 5.000000e-01 : f32
      %79 = vector.broadcast %cst_44 : f32 to vector<1x1xf32>
      %80 = arith.mulf %79, %78 : vector<1x1xf32>
      %cst_45 = arith.constant 9.99999997E-7 : f32
      %81 = vector.broadcast %cst_45 : f32 to vector<1x1xf32>
      %82 = arith.addf %80, %81 : vector<1x1xf32>
      %cst_46 = arith.constant 2.000000e-01 : f32
      %83 = vector.broadcast %cst_46 : f32 to vector<1x1xf32>
      %84 = arith.divf %83, %82 : vector<1x1xf32>
      %85 = arith.addf %59, %84 : vector<1x1xf32>
      %c0_47 = arith.constant 0 : index
      %c0_48 = arith.constant 0 : index
      %86 = vector.load %arg3[%c0_47, %c0_48] : memref<1x1xf32, #tpu.memory_space<vmem>>, vector<1x1xf32>
      tpu.vector_store %arg3[%c0_47, %c0_48], %85 {strides = array<i32>} : memref<1x1xf32, #tpu.memory_space<vmem>>, vector<1x1xf32>,
    } else {
    }
    return
  }
  func.func @transform_0(%arg0: i32) -> (i32, i32) {
    %c0_i32 = arith.constant 0 : i32
    %c0_i32_0 = arith.constant 0 : i32
    return %arg0, %c0_i32 : i32, i32
  }
  func.func @transform_1(%arg0: i32) -> (i32, i32) {
    %c0_i32 = arith.constant 0 : i32
    %c0_i32_0 = arith.constant 0 : i32
    return %arg0, %c0_i32 : i32, i32
  }
  func.func @transform_2(%arg0: i32) -> (i32, i32) {
    %c0_i32 = arith.constant 0 : i32
    %c0_i32_0 = arith.constant 0 : i32
    %c0_i32_1 = arith.constant 0 : i32
    return %c0_i32, %c0_i32_0 : i32, i32
  }
}

</mosaic_0001>

<bundles_post_ra>
// kernel: tpu_custom_call.1
= control target key start
LH: loop header
LB: loop body
LE: loop exit
PB: predicated region body
PF: predicated region fallthrough
CT: control target
= control target key end

     0   :  { %7 = vsyncpa [#allocation6], 0  ;;  %s349_s0 = inlined_call_operand.hbm [shape: f32[2,32], index: 0, kind: input, shape index: {}]   ;;  %s350_s1 = inlined_call_operand.hbm [shape: f32[2,32], index: 1, kind: input, shape index: {}]   ;;  %s351_s2 = inlined_call_operand.hbm [shape: f32[1,1], index: 2, kind: output, shape index: {}]  }
   0x1   :  { %8 = vsyncpa [#allocation9], 0 }
   0x2   :  { %9 = vsyncpa [#allocation7], 0  ;;  %s15_s11 = sshll.u32 %s349_s0, 4  ;;  %s302_s12 = smov [#allocation5]   ;;  %s16_s11 = int_to_ptr.hbm [resolvable:$true] %s15_s11 }
   0x3   :  { %s17_s13 = sshll.u32 %s302_s12, 4  ;;  %s26_s16 = sshll.u32 %s350_s1, 4  ;;  %s18_s13 = int_to_ptr.vmem [resolvable:$true] %s17_s13  ;;  %s27_s16 = int_to_ptr.hbm [resolvable:$true] %s26_s16 }
   0x4   :  { %20 = dma.hbm_to_vmem [thread:$0]  %s16_s11, 32, %s18_s13, [#allocation6]  }
   0x5   :  { %s303_s17 = smov [#allocation8]  }
   0x6   :  { %s28_s18 = sshll.u32 %s303_s17, 4  ;;  %s29_s18 = int_to_ptr.vmem [resolvable:$true] %s28_s18 }
   0x7   :  { %31 = dma.hbm_to_vmem [thread:$0]  %s27_s16, 32, %s29_s18, [#allocation9]  }
   0x8   :  { %296 = dma.done.wait [#allocation6], 32  }
   0x9   :  { %297 = vsyncadd [#allocation6], 4294967264 }
   0xa   :  { %298 = dma.done.wait [#allocation9], 32  }
   0xb   :  { %299 = vsyncadd [#allocation9], 4294967264  ;;  %vm44_vm0 = vcmask 253952   ;;  %v304_v0 = vmov 0.0   ;;  %vm53_vm1 = vcmask 254976   ;;  %v88_v29 = vlaneseq  ;;  %s307_s0 = smov [#allocation10]  }
   0xc   :  { %46 = vst.msk [vmem:[#allocation3] sm:$0x1] %vm44_vm0, %v304_v0  ;;  %v48_v1 = vld [vmem:[#allocation5] sm:$0x3]  ;;  %v49_v6 = vld [vmem:[#allocation8] sm:$0x3] }
   0xd   :  { %45 = vst.msk [vmem:[#allocation2] sm:$0x1] %vm44_vm0, %v304_v0  ;;  %v65_v2 = vsel %vm53_vm1, %v48_v1, 0.0  ;;  %v75_v3 = vmul.f32 %v48_v1, %v48_v1  ;;  %v50_v9 = vsub.f32 %v48_v1, %v49_v6  ;;  %v89_v33 = vand.u32 127, %v88_v29  ;;  %s195_s1 = sshll.u32 %s307_s0, 4  ;;  %s197_s21 = sshll.u32 %s351_s2, 4  ;;  %s196_s1 = int_to_ptr.vmem [resolvable:$true] %s195_s1  ;;  %s198_s21 = int_to_ptr.hbm [resolvable:$true] %s197_s21 }
   0xe   :  { %47 = vst.msk [vmem:[#allocation4] sm:$0x1] %vm44_vm0, %v304_v0  ;;  %v66_v4 = vrot.slane %v65_v2, 4  ;;  %v305_v47 = vmov 32.0   ;;  %v306_v48 = vmov 31.0   ;;  %vm188_vm13 = vcmask 0  }
   0xf   :  { %v76_v5 = vsel %vm53_vm1, %v75_v3, 0.0  ;;  %v52_v12 = vmul.f32 %v50_v9, %v50_v9  ;;  %vm90_vm2 = vcmp.lt.s32.totalorder %v89_v33, 16  ;;  %214 = vrcp.f32 %v305_v47 }
  0x10   :  { %v67_v7 = vadd.f32 %v66_v4, %v65_v2  ;;  %v77_v8 = vrot.slane %v76_v5, 4  ;;  %216 = vrcp.f32 %v306_v48 }
  0x11   :  { %v54_v15 = vsel %vm53_vm1, %v52_v12, 0.0 }
  0x12   :  { %v68_v10 = vrot.slane %v67_v7, 2  ;;  %v78_v11 = vadd.f32 %v77_v8, %v76_v5  ;;  %v55_v16 = vrot.slane %v54_v15, 4 }
  0x13   :  { %v64_v19 = vld [vmem:[#allocation3] sm:$0x1] }
  0x14   :  { %v69_v13 = vadd.f32 %v68_v10, %v67_v7  ;;  %v79_v14 = vrot.slane %v78_v11, 2  ;;  %v56_v20 = vadd.f32 %v55_v16, %v54_v15  ;;  %v51_v31 = vld [vmem:[#allocation2] sm:$0x1] }
  0x15   :  { %v74_v23 = vld [vmem:[#allocation4] sm:$0x1]  ;;  %v215_v49 = vpop.eup %214 }
  0x16   :  { %v70_v17 = vrot.slane %v69_v13, 1  ;;  %v80_v18 = vadd.f32 %v79_v14, %v78_v11  ;;  %v57_v24 = vrot.slane %v56_v20, 2  ;;  %v121_v50 = vmul.f32 32.0, %v215_v49  ;;  %v217_v51 = vpop.eup %216 }
  0x17   :  { %v132_v53 = vmul.f32 31.0, %v217_v51  ;;  %vm125_vm3 = vweird.f32 %v215_v49  ;;  %vm136_vm4 = vweird.f32 %v217_v51 }
  0x18   :  { %v71_v21 = vadd.f32 %v70_v17, %v69_v13  ;;  %v81_v22 = vrot.slane %v80_v18, 1  ;;  %v58_v27 = vadd.f32 %v57_v24, %v56_v20  ;;  %v122_v52 = vsub.f32 1.0, %v121_v50 }
  0x19   :  { %v133_v56 = vsub.f32 1.0, %v132_v53 }
  0x1a   :  { %v72_v25 = vadd.f32 %v71_v21, %v64_v19  ;;  %v82_v26 = vadd.f32 %v81_v22, %v80_v18  ;;  %v59_v30 = vrot.slane %v58_v27, 1  ;;  %v123_v55 = vmul.f32 %v215_v49, %v122_v52 }
  0x1b   :  { %v134_v59 = vmul.f32 %v217_v51, %v133_v56 }
  0x1c   :  { %73 = vst.msk [vmem:[#allocation3] sm:$0x1] %vm44_vm0, %v72_v25  ;;  %v83_v28 = vadd.f32 %v82_v26, %v74_v23  ;;  %v60_v32 = vadd.f32 %v59_v30, %v58_v27  ;;  %v124_v58 = vadd.f32 %v215_v49, %v123_v55 }
  0x1d   :  { %v135_v62 = vadd.f32 %v217_v51, %v134_v59 }
  0x1e   :  { %84 = vst.msk [vmem:[#allocation4] sm:$0x1] %vm44_vm0, %v83_v28  ;;  %v61_v34 = vadd.f32 %v60_v32, %v51_v31  ;;  %v341_v60 = vsel %vm125_vm3, %v215_v49, %v124_v58 }
  0x1f   :  { %v137_v4 = vsel %vm136_vm4, %v217_v51, %v135_v62 }
  0x20   :  { %63 = vst.msk [vmem:[#allocation2] sm:$0x1] %vm44_vm0, %v61_v34 }
  0x23   :  { %v100_v35 = vld [vmem:[#allocation3] sm:$0x1] }
  0x24   :  { %v101_v36 = vsel %vm44_vm0, %v100_v35, 0.0  ;;  %v104_v39 = vsel %vm90_vm2, %v100_v35, 0.0 }
  0x25   :  { %102 = vadd.xlane.f32.xlu0 %v101_v36  ;;  %v109_v37 = vld [vmem:[#allocation4] sm:$0x1]  ;;  %v105_v41 = vsel %vm44_vm0, %v104_v39, 0.0 }
  0x26   :  { %v110_v38 = vsel %vm44_vm0, %v109_v37, 0.0  ;;  %v113_v40 = vsel %vm90_vm2, %v109_v37, 0.0 }
  0x27   :  { %111 = vadd.xlane.f32.xlu1 %v110_v38  ;;  %v91_v42 = vld [vmem:[#allocation2] sm:$0x1]  ;;  %v114_v44 = vsel %vm44_vm0, %v113_v40, 0.0 }
  0x28   :  { %v92_v43 = vsel %vm44_vm0, %v91_v42, 0.0  ;;  %v95_v45 = vsel %vm90_vm2, %v91_v42, 0.0 }
  0x29   :  { %93 = vadd.xlane.f32.xlu2 %v92_v43  ;;  %v96_v46 = vsel %vm44_vm0, %v95_v45, 0.0 }
  0x2d   :  { %106 = vadd.xlane.f32.xlu0 %v105_v41 }
  0x2f   :  { %115 = vadd.xlane.f32.xlu1 %v114_v44 }
  0x31   :  { %97 = vadd.xlane.f32.xlu2 %v96_v46 }
  0x98   :  { %v103_v54 = vpop.xlane.xlu0 %102 }
  0x9a   :  { %v112_v57 = vpop.xlane.xlu1 %111 }
  0x9c   :  { %v94_v34 = vpop.xlane.xlu2 %93 }
  0xa0   :  { %v107_v61 = vpop.xlane.xlu0 %106 }
  0xa1   :  { %v108_v63 = vsub.f32 %v103_v54, %v107_v61  ;;  %v128_v0 = vmul.f32 %v107_v61, %v107_v61 }
  0xa2   :  { %v116_v1 = vpop.xlane.xlu1 %115 }
  0xa3   :  { %v139_v2 = vmul.f32 %v108_v63, %v108_v63  ;;  %v129_v3 = vmul.f32 %v128_v0, %v341_v60  ;;  %v117_v6 = vsub.f32 %v112_v57, %v116_v1 }
  0xa4   :  { %v98_v38 = vpop.xlane.xlu2 %97 }
  0xa5   :  { %v140_v5 = vmul.f32 %v139_v2, %v341_v60  ;;  %v130_v7 = vsub.f32 %v116_v1, %v129_v3  ;;  %v99_v41 = vsub.f32 %v94_v34, %v98_v38  ;;  %v118_v42 = vmul.f32 2.0, %v98_v38 }
  0xa7   :  { %v138_v8 = vmul.f32 %v137_v4, %v130_v7  ;;  %v141_v9 = vsub.f32 %v117_v6, %v140_v5  ;;  %v119_v47 = vadd.f32 %v118_v42, %v99_v41 }
  0xa9   :  { %v142_v10 = vmul.f32 %v141_v9, %v137_v4  ;;  %v143_v11 = vmax.f32 %v138_v8, 0.0  ;;  %v127_v52 = vmul.f32 %v341_v60, %v119_v47 }
  0xab   :  { %218 = vrsqrt.f32 %v143_v11  ;;  %v156_v12 = vmax.f32 %v142_v10, 0.0  ;;  %vm151_vm5 = vcmp.eq.f32.partialorder %v143_v11, inf  ;;  %v154_v28 = vand.u32 2147483648, %v143_v11 }
  0xac   :  { %vm153_vm7 = vcmp.eq.f32.partialorder %v143_v11, 0.0 }
  0xad   :  { %220 = vrsqrt.f32 %v156_v12  ;;  %vm164_vm6 = vcmp.eq.f32.partialorder %v156_v12, inf  ;;  %v167_v29 = vand.u32 2147483648, %v156_v12  ;;  %vm166_vm8 = vcmp.eq.f32.partialorder %v156_v12, 0.0 }
  0xb1   :  { %v219_v13 = vpop.eup %218 }
  0xb2   :  { %v145_v14 = vmul.f32 %v219_v13, %v143_v11 }
  0xb3   :  { %v221_v15 = vpop.eup %220 }
  0xb4   :  { %v146_v16 = vmul.f32 %v219_v13, %v145_v14  ;;  %v158_v17 = vmul.f32 %v221_v15, %v156_v12 }
  0xb6   :  { %v147_v18 = vmul.f32 0.5, %v146_v16  ;;  %v159_v19 = vmul.f32 %v221_v15, %v158_v17 }
  0xb8   :  { %v148_v20 = vsub.f32 1.5, %v147_v18  ;;  %v160_v21 = vmul.f32 0.5, %v159_v19 }
  0xba   :  { %v149_v22 = vmul.f32 %v219_v13, %v148_v20  ;;  %v161_v23 = vsub.f32 1.5, %v160_v21 }
  0xbc   :  { %v150_v24 = vmul.f32 %v149_v22, %v143_v11  ;;  %v162_v25 = vmul.f32 %v221_v15, %v161_v23 }
  0xbe   :  { %v152_v26 = vsel %vm151_vm5, %v143_v11, %v150_v24  ;;  %v163_v27 = vmul.f32 %v162_v25, %v156_v12 }
  0xbf   :  { %v155_v31 = vsel %vm153_vm7, %v154_v28, %v152_v26 }
  0xc0   :  { %v165_v30 = vsel %vm164_vm6, %v156_v12, %v163_v27 }
  0xc1   :  { %v168_v32 = vsel %vm166_vm8, %v167_v29, %v165_v30 }
  0xc2   :  { %v169_v33 = vadd.f32 %v168_v32, %v155_v31 }
  0xc4   :  { %v170_v35 = vmul.f32 0.5, %v169_v33 }
  0xc6   :  { %v171_v36 = vadd.f32 1e-06, %v170_v35 }
  0xc8   :  { %222 = vrcp.f32 %v171_v36  ;;  %v183_v43 = vand.u32 2147483648, %v171_v36  ;;  %v181_v45 = vand.u32 2147483647, %v171_v36  ;;  %vm177_vm10 = vweird.f32 %v171_v36 }
  0xca   :  { %v184_v48 = vor.u32 1.1754944e-38, %v183_v43  ;;  %vm182_vm12 = vcmp.eq.f32.partialorder %v181_v45, 8.507059e+37 }
  0xce   :  { %v223_v37 = vpop.eup %222 }
  0xcf   :  { %v173_v39 = vmul.f32 %v223_v37, %v171_v36  ;;  %vm178_vm9 = vweird.f32 %v223_v37 }
  0xd0   :  { %vm179_vm11 = vmor %vm177_vm10, %vm178_vm9 }
  0xd1   :  { %v174_v40 = vsub.f32 1.0, %v173_v39 }
  0xd3   :  { %v175_v44 = vmul.f32 %v223_v37, %v174_v40 }
  0xd5   :  { %v176_v46 = vadd.f32 %v223_v37, %v175_v44 }
  0xd7   :  { %v180_v49 = vsel %vm179_vm11, %v223_v37, %v176_v46 }
  0xd8   :  { %v185_v50 = vsel %vm182_vm12, %v184_v48, %v180_v49 }
  0xd9   :  { %v186_v51 = vmul.f32 0.2, %v185_v50 }
  0xdb   :  { %v187_v53 = vadd.f32 %v186_v51, %v127_v52 }
  0xdd   :  { %189 = vst.msk [vmem:[#allocation10] sm:$0x1] %vm188_vm13, %v187_v53 }
  0xde   :  { %200 = dma.vmem_to_hbm [thread:$0]  %s196_s1, 16, %s198_s21, [#allocation7]  }
  0xdf   :  { %300 = dma.done.wait [#allocation7], 16  }
  0xe0   :  { %301 = vsyncadd [#allocation7], 4294967280 }
  0xe1   :  { %205 = vsyncpa [#allocation6], 1 }
  0xe2   :  { %206 = vsyncpa [#allocation9], 1 }
  0xe3   :  { %207 = vsyncpa [#allocation7], 1 }

</bundles_post_ra>
